<compile_context>
chip_gen: v7x
topology: tpu7x:2x2x1
jax: 0.10.0
libtpu: 0.0.40
codegen_flags: <defaults>
</compile_context>

<pallas_src>
import functools

import jax
import jax.numpy as jnp
from jax.experimental import pallas as pl
from jax.experimental.pallas import tpu as pltpu

_LANES = 128
_SUB = 8
_CHUNK = 512          # rows per in-kernel chunk (bounds intermediate VMEM)


def _cdiv(a, b):
    return -(-a // b)


def _round_up(a, b):
    return _cdiv(a, b) * b


def _device_defaults():
    """(pipeline-buffer byte budget, num_splits) per TPU generation."""
    kind = ""
    try:
        kind = jax.devices()[0].device_kind.lower()
    except Exception:
        pass
    if ("v5 lite" in kind) or ("v5e" in kind) or ("v5litepod" in kind):
        return 8 * 1024 * 1024, 1          # 16 MiB scoped default -> 8 MiB of buffers
    if "v7" in kind:
        return 16 * 1024 * 1024, 2         # 2 TensorCores -> shard the split axis
    return 16 * 1024 * 1024, 1             # v6e & others: single TC, 32 MiB scoped


def _focal_loss_kernel(alpha_ref, x_ref, t_ref, out_ref, acc_ref, *,
                       gamma, m_rows, tm, chunk, tiles_per_split,
                       apply_row_mask):
    c = pl.program_id(0)          # "parallel" split axis (megacore-shardable)
    j = pl.program_id(1)          # "arbitrary" reduction axis

    @pl.when(j == 0)
    def _():
        acc_ref[...] = jnp.zeros_like(acc_ref)

    pw = alpha_ref[0]                         # scalar pos_weight from SMEM
    row_base = (c * tiles_per_split + j) * tm  # first global row of this tile

    def chunk_sum(r0, nrows):
        """(8,128) partial sum of `nrows` rows starting at tile row r0."""
        x = x_ref[pl.ds(r0, nrows), :].astype(jnp.float32)
        t = t_ref[pl.ds(r0, nrows), :].astype(jnp.float32)

        # Numerically stable BCE-with-logits with pos_weight (matches PyTorch):
        #   bce = (1-t)*x + (1 + (pw-1)*t) * (max(-x,0) + log1p(exp(-|x|)))
        softplus_neg_x = jnp.maximum(-x, 0.0) + jnp.log1p(jnp.exp(-jnp.abs(x)))
        bce = (1.0 - t) * x + (1.0 + (pw - 1.0) * t) * softplus_neg_x

        g = float(gamma)
        if g == 0.0:
            focal = bce                       # (1-pt)**0 == 1 (incl. 0**0, like torch)
        elif g == int(g) and 0 < int(g) <= 8:
            one_m_pt = 1.0 - jnp.exp(-bce)    # VPU multiplies, no pow
            mod = one_m_pt
            for _ in range(int(g) - 1):
                mod = mod * one_m_pt
            focal = mod * bce
        else:
            one_m_pt = 1.0 - jnp.exp(-bce)
            safe = jnp.where(one_m_pt > 0.0, one_m_pt, 1.0)
            mod = jnp.where(one_m_pt > 0.0, jnp.power(safe, jnp.float32(g)), 0.0)
            focal = mod * bce

        if apply_row_mask:
            # Only emitted when the trailing block genuinely overshoots the
            # array (lane-aligned inputs, no HBM pad). Row-level: 1 cmp + 1 sel.
            rows = jax.lax.broadcasted_iota(jnp.int32, (nrows, _LANES), 0)
            thresh = m_rows - row_base - r0          # scalar
            focal = jnp.where(rows < thresh, focal, 0.0)

        return jnp.sum(focal.reshape(nrows // _SUB, _SUB, _LANES), axis=0)

    n_full = tm // chunk
    rem = tm - n_full * chunk

    acc = jnp.zeros((_SUB, _LANES), jnp.float32)
    if n_full == 1:
        acc = acc + chunk_sum(0, chunk)                     # static slice
    elif n_full > 1:
        def body(i, a):
            r0 = pl.multiple_of(i * chunk, chunk)
            return a + chunk_sum(r0, chunk)
        acc = jax.lax.fori_loop(0, n_full, body, acc)
    if rem > 0:
        acc = acc + chunk_sum(n_full * chunk, rem)

    acc_ref[...] += acc

    @pl.when(j == tiles_per_split - 1)
    def _():
        out_ref[...] = acc_ref[...]


def focal_loss(inputs, target, gamma=0.0, alpha=None, *, tm=None, num_splits=None):
    """Pallas implementation of FocalLoss.forward (returns a scalar)."""
    assert inputs.shape == target.shape
    if alpha is None:
        alpha = jnp.ones((1,), dtype=jnp.float32)
    alpha = jnp.asarray(alpha, dtype=jnp.float32).reshape(-1)
    # TODO(synk): per-channel pos_weight (alpha.size > 1) would need a
    # channel-indexed broadcast in-kernel; only the scalar case is handled.
    assert alpha.size == 1, "only scalar pos_weight (alpha) is supported"

    n = int(inputs.size)
    assert n > 0
    m = _cdiv(n, _LANES)                       # lane-dense rows

    buf_budget, ns_default = _device_defaults()
    ns = int(num_splits) if num_splits is not None else ns_default
    ns = max(1, ns)
    if m < ns * _SUB:                          # not enough rows for every split
        ns = 1

    # Row-tile cap from the pipeline-buffer budget:
    # 2 buffers * (x+t bytes per row) * tm_cap <= buf_budget.
    bytes_per_row = _LANES * (inputs.dtype.itemsize + target.dtype.itemsize)
    tm_cap = int(tm) if tm is not None else buf_budget // (2 * bytes_per_row)
    tm_cap = max(_SUB, (tm_cap // _SUB) * _SUB)

    # Pick tiles_per_split first, then shrink the tile to fit -> overshoot is
    # at most 7 rows per tile instead of up to num_splits*tm rows.
    tiles_per_split = max(1, _cdiv(m, ns * tm_cap))
    tm_eff = _round_up(_cdiv(m, ns * tiles_per_split), _SUB)
    rows_grid = ns * tiles_per_split * tm_eff          # >= m

    lane_aligned = (n == m * _LANES)
    no_oob_block = (rows_grid - m) < tm_eff             # every block starts inside

    if lane_aligned and no_oob_block:
        # No HBM pad copy (8 B/elem of traffic instead of ~24); the trailing
        # partial block (if any) is masked in-kernel at row granularity.
        x2 = inputs.reshape(m, _LANES)
        t2 = target.reshape(m, _LANES)
        apply_row_mask = (rows_grid != m)
    else:
        # Ragged size: pad (only to the grid extent) with values that make
        # focal == 0 for every gamma (x=+100 -> softplus underflows, t=1), so
        # no per-element mask is needed on the hot path.
        pad = rows_grid * _LANES - n
        x2 = jnp.pad(inputs.reshape(-1), (0, pad),
                     constant_values=100.0).reshape(rows_grid, _LANES)
        t2 = jnp.pad(target.reshape(-1), (0, pad),
                     constant_values=1.0).reshape(rows_grid, _LANES)
        apply_row_mask = False

    kernel = functools.partial(
        _focal_loss_kernel,
        gamma=float(gamma), m_rows=m, tm=tm_eff, chunk=min(tm_eff, _CHUNK),
        tiles_per_split=tiles_per_split, apply_row_mask=apply_row_mask)

    row_map = lambda c, j, alpha_s: (c * tiles_per_split + j, 0)

    n_transc = (2 if float(gamma) == 0.0 else 3) * n
    cost = pl.CostEstimate(
        flops=20 * n,
        transcendentals=n_transc,
        bytes_accessed=n * (inputs.dtype.itemsize + target.dtype.itemsize)
        + ns * _SUB * _LANES * 4,
    )

    partials = pl.pallas_call(
        kernel,
        out_shape=jax.ShapeDtypeStruct((ns * _SUB, _LANES), jnp.float32),
        grid_spec=pltpu.PrefetchScalarGridSpec(
            num_scalar_prefetch=1,                       # alpha -> SMEM
            grid=(ns, tiles_per_split),
            in_specs=[
                pl.BlockSpec((tm_eff, _LANES), row_map),
                pl.BlockSpec((tm_eff, _LANES), row_map),
            ],
            out_specs=pl.BlockSpec((_SUB, _LANES), lambda c, j, alpha_s: (c, 0)),
            scratch_shapes=[pltpu.VMEM((_SUB, _LANES), jnp.float32)],
        ),
        compiler_params=pltpu.CompilerParams(
            dimension_semantics=("parallel", "arbitrary"),
        ),
        cost_estimate=cost,
    )(alpha, x2, t2)

    # Single cross-lane reduce + mean, done once outside the kernel.
    return jnp.sum(partials) / jnp.float32(n)


def _focal_loss_ref(inputs, target, gamma, alpha):
    x = inputs.astype(jnp.float32)
    t = target.astype(jnp.float32)
    pw = jnp.broadcast_to(jnp.asarray(alpha, jnp.float32).reshape(-1), x.shape)
    sp = jnp.maximum(-x, 0.0) + jnp.log1p(jnp.exp(-jnp.abs(x)))
    bce = (1.0 - t) * x + (1.0 + (pw - 1.0) * t) * sp
    pt = jnp.exp(-bce)
    return jnp.mean(jnp.power(1.0 - pt, jnp.float32(gamma)) * bce)


if __name__ == "__main__":
    key = jax.random.PRNGKey(0)
    k_x, k_t, k_x2, k_t2 = jax.random.split(key, 4)

    # Small NCHW-style logits / binary targets, as the module's forward implies.
    x = jax.random.normal(k_x, (2, 4, 16, 16), dtype=jnp.float32)
    tgt = (jax.random.uniform(k_t, (2, 4, 16, 16)) > 0.5).astype(jnp.float32)
    alpha = jnp.array([1.0], dtype=jnp.float32)

    loss = focal_loss(x, tgt, gamma=2.0, alpha=alpha)
    loss = jax.block_until_ready(loss)
    ref = _focal_loss_ref(x, tgt, 2.0, alpha)
    assert jnp.allclose(loss, ref, rtol=1e-5, atol=1e-6), (loss, ref)

    # Ragged shape (exercises the safe-constant pad path), gamma=0, alpha != 1.
    x2 = jax.random.normal(k_x2, (3, 5, 7, 11), dtype=jnp.float32)
    tgt2 = (jax.random.uniform(k_t2, (3, 5, 7, 11)) > 0.5).astype(jnp.float32)
    alpha2 = jnp.array([1.5], dtype=jnp.float32)
    loss2 = jax.block_until_ready(focal_loss(x2, tgt2, gamma=0.0, alpha=alpha2))
    ref2 = _focal_loss_ref(x2, tgt2, 0.0, alpha2)
    assert jnp.allclose(loss2, ref2, rtol=1e-5, atol=1e-6), (loss2, ref2)

    # Lane-aligned but non-multiple-of-tile row count (exercises the no-pad,
    # partial-trailing-block + row-mask path), integer gamma > 1.
    x3 = jax.random.normal(k_x, (3, 7, 128), dtype=jnp.float32)      # 21 rows
    tgt3 = (jax.random.uniform(k_t, (3, 7, 128)) > 0.5).astype(jnp.float32)
    loss3 = jax.block_until_ready(focal_loss(x3, tgt3, gamma=2.0, alpha=alpha))
    ref3 = _focal_loss_ref(x3, tgt3, 2.0, alpha)
    assert jnp.allclose(loss3, ref3, rtol=1e-5, atol=1e-6), (loss3, ref3)

    print("KERNEL_OK")
</pallas_src>

<mosaic_0001>
module attributes {stable_mosaic.version = 11 : i64} {
  func.func @_focal_loss_kernel(%arg0: i32, %arg1: i32, %arg2: memref<1xf32, #tpu.memory_space<smem>>, %arg3: memref<16x128xf32, #tpu.memory_space<vmem>>, %arg4: memref<16x128xf32, #tpu.memory_space<vmem>>, %arg5: memref<8x128xf32, #tpu.memory_space<vmem>>, %arg6: memref<8x128xf32, #tpu.memory_space<vmem>>) attributes {dimension_semantics = [#tpu.dimension_semantics<parallel>, #tpu.dimension_semantics<arbitrary>], iteration_bounds = array<i64: 1, 1>, scalar_prefetch = 1 : i64, scratch_operands = 1 : i64, tpu.core_type = #tpu.core_type<tc>, window_params = [{transform_indices = @transform_0, window_bounds = array<i64: 16, 128>}, {transform_indices = @transform_1, window_bounds = array<i64: 16, 128>}, {transform_indices = @transform_2, window_bounds = array<i64: 8, 128>}]} {
    %c0_i32 = arith.constant 0 : i32
    %0 = arith.cmpi eq, %arg1, %c0_i32 : i32
    %1 = arith.extui %0 : i1 to i32
    %c0_i32_0 = arith.constant 0 : i32
    %2 = arith.cmpi ne, %1, %c0_i32_0 : i32
    scf.if %2 {
      %cst_20 = arith.constant 0.000000e+00 : f32
      %43 = vector.broadcast %cst_20 : f32 to vector<8x128xf32>
      %c0_21 = arith.constant 0 : index
      %c0_22 = arith.constant 0 : index
      %44 = vector.load %arg6[%c0_21, %c0_22] : memref<8x128xf32, #tpu.memory_space<vmem>>, vector<8x128xf32>
      tpu.vector_store %arg6[%c0_21, %c0_22], %43 {strides = array<i32>} : memref<8x128xf32, #tpu.memory_space<vmem>>, vector<8x128xf32>,
    } else {
    }
    %c0 = arith.constant 0 : index
    %3 = memref.load %arg2[%c0] : memref<1xf32, #tpu.memory_space<smem>>
    %cst = arith.constant 0.000000e+00 : f32
    %4 = vector.broadcast %cst : f32 to vector<8x128xf32>
    %c0_1 = arith.constant 0 : index
    %c0_2 = arith.constant 0 : index
    %5 = vector.load %arg3[%c0_1, %c0_2] : memref<16x128xf32, #tpu.memory_space<vmem>>, vector<16x128xf32>
    %c0_3 = arith.constant 0 : index
    %c0_4 = arith.constant 0 : index
    %6 = vector.load %arg4[%c0_3, %c0_4] : memref<16x128xf32, #tpu.memory_space<vmem>>, vector<16x128xf32>
    %cst_5 = arith.constant 0.000000e+00 : f32
    %7 = vector.broadcast %cst_5 : f32 to vector<16x128xf32>
    %8 = arith.subf %7, %5 : vector<16x128xf32>
    %cst_6 = arith.constant 0.000000e+00 : f32
    %9 = vector.broadcast %cst_6 : f32 to vector<16x128xf32>
    %10 = arith.maximumf %8, %9 : vector<16x128xf32>
    %11 = math.absf %5 : vector<16x128xf32>
    %cst_7 = arith.constant 0.000000e+00 : f32
    %12 = vector.broadcast %cst_7 : f32 to vector<16x128xf32>
    %13 = arith.subf %12, %11 : vector<16x128xf32>
    %14 = math.exp %13 : vector<16x128xf32>
    %15 = math.log1p %14 : vector<16x128xf32>
    %16 = arith.addf %10, %15 : vector<16x128xf32>
    %cst_8 = arith.constant 1.000000e+00 : f32
    %17 = vector.broadcast %cst_8 : f32 to vector<16x128xf32>
    %18 = arith.subf %17, %6 : vector<16x128xf32>
    %19 = arith.mulf %18, %5 : vector<16x128xf32>
    %cst_9 = arith.constant 1.000000e+00 : f32
    %20 = arith.subf %3, %cst_9 : f32
    %21 = vector.broadcast %20 : f32 to vector<16x128xf32>
    %22 = arith.mulf %21, %6 : vector<16x128xf32>
    %cst_10 = arith.constant 1.000000e+00 : f32
    %23 = vector.broadcast %cst_10 : f32 to vector<16x128xf32>
    %24 = arith.addf %23, %22 : vector<16x128xf32>
    %25 = arith.mulf %24, %16 : vector<16x128xf32>
    %26 = arith.addf %19, %25 : vector<16x128xf32>
    %cst_11 = arith.constant 0.000000e+00 : f32
    %27 = vector.broadcast %cst_11 : f32 to vector<16x128xf32>
    %28 = arith.subf %27, %26 : vector<16x128xf32>
    %29 = math.exp %28 : vector<16x128xf32>
    %cst_12 = arith.constant 1.000000e+00 : f32
    %30 = vector.broadcast %cst_12 : f32 to vector<16x128xf32>
    %31 = arith.subf %30, %29 : vector<16x128xf32>
    %32 = arith.mulf %31, %31 : vector<16x128xf32>
    %33 = arith.mulf %32, %26 : vector<16x128xf32>
    %34 = vector.shape_cast %33 : vector<16x128xf32> to vector<2x8x128xf32>
    %cst_13 = arith.constant dense<0.000000e+00> : vector<8x128xf32>
    %35 = vector.multi_reduction <add>, %34, %cst_13 [0] : vector<2x8x128xf32> to vector<8x128xf32>
    %36 = arith.addf %4, %35 : vector<8x128xf32>
    %c0_14 = arith.constant 0 : index
    %c0_15 = arith.constant 0 : index
    %37 = vector.load %arg6[%c0_14, %c0_15] : memref<8x128xf32, #tpu.memory_space<vmem>>, vector<8x128xf32>
    %38 = arith.addf %37, %36 : vector<8x128xf32>
    %c0_16 = arith.constant 0 : index
    %c0_17 = arith.constant 0 : index
    %39 = vector.load %arg6[%c0_16, %c0_17] : memref<8x128xf32, #tpu.memory_space<vmem>>, vector<8x128xf32>
    tpu.vector_store %arg6[%c0_16, %c0_17], %38 {strides = array<i32>} : memref<8x128xf32, #tpu.memory_space<vmem>>, vector<8x128xf32>,
    %c0_i32_18 = arith.constant 0 : i32
    %40 = arith.cmpi eq, %arg1, %c0_i32_18 : i32
    %41 = arith.extui %40 : i1 to i32
    %c0_i32_19 = arith.constant 0 : i32
    %42 = arith.cmpi ne, %41, %c0_i32_19 : i32
    scf.if %42 {
      %c0_20 = arith.constant 0 : index
      %c0_21 = arith.constant 0 : index
      %43 = vector.load %arg6[%c0_20, %c0_21] : memref<8x128xf32, #tpu.memory_space<vmem>>, vector<8x128xf32>
      %c0_22 = arith.constant 0 : index
      %c0_23 = arith.constant 0 : index
      %44 = vector.load %arg5[%c0_22, %c0_23] : memref<8x128xf32, #tpu.memory_space<vmem>>, vector<8x128xf32>
      tpu.vector_store %arg5[%c0_22, %c0_23], %43 {strides = array<i32>} : memref<8x128xf32, #tpu.memory_space<vmem>>, vector<8x128xf32>,
    } else {
    }
    return
  }
  func.func @transform_0(%arg0: i32, %arg1: i32, %arg2: memref<1xf32, #tpu.memory_space<smem>>) -> (i32, i32) {
    %c1_i32 = arith.constant 1 : i32
    %0 = arith.muli %arg0, %c1_i32 : i32
    %1 = arith.addi %0, %arg1 : i32
    %c0_i32 = arith.constant 0 : i32
    %c0_i32_0 = arith.constant 0 : i32
    return %1, %c0_i32 : i32, i32
  }
  func.func @transform_1(%arg0: i32, %arg1: i32, %arg2: memref<1xf32, #tpu.memory_space<smem>>) -> (i32, i32) {
    %c1_i32 = arith.constant 1 : i32
    %0 = arith.muli %arg0, %c1_i32 : i32
    %1 = arith.addi %0, %arg1 : i32
    %c0_i32 = arith.constant 0 : i32
    %c0_i32_0 = arith.constant 0 : i32
    return %1, %c0_i32 : i32, i32
  }
  func.func @transform_2(%arg0: i32, %arg1: i32, %arg2: memref<1xf32, #tpu.memory_space<smem>>) -> (i32, i32) {
    %c0_i32 = arith.constant 0 : i32
    %c0_i32_0 = arith.constant 0 : i32
    return %arg0, %c0_i32 : i32, i32
  }
}

</mosaic_0001>

<bundles_post_ra>
// kernel: tpu_custom_call.1
= control target key start
LH: loop header
LB: loop body
LE: loop exit
PB: predicated region body
PF: predicated region fallthrough
CT: control target
= control target key end

     0   :  { %9 = vsyncpa [#allocation6], 0  ;;  %s302_s0 = inlined_call_operand.<no memory space> [shape: f32[1], index: 0, kind: input, shape index: {}]   ;;  %s303_s1 = inlined_call_operand.hbm [shape: f32[16,128], index: 1, kind: input, shape index: {}]   ;;  %s304_s2 = inlined_call_operand.hbm [shape: f32[16,128], index: 2, kind: input, shape index: {}]   ;;  %s305_s3 = inlined_call_operand.hbm [shape: f32[8,128], index: 3, kind: output, shape index: {}]  }
   0x1   :  { %10 = vsyncpa [#allocation9], 0 }
   0x2   :  { %11 = vsyncpa [#allocation7], 0  ;;  %s238_s12 = smov [#allocation5]   ;;  %s166_s16 = scalar_lea.hbm %s303_s1, 256 }
   0x3   :  { %s21_s13 = sshll.u32 %s238_s12, 4  ;;  %p167_p0 = scmp.ne.s32.totalorder %s303_s1, %s166_s16  ;;  %s22_s13 = int_to_ptr.vmem [resolvable:$true] %s21_s13 }
   0x4   :  { %p170_p1 = scmp.lt.u32.totalorder %s166_s16, %s303_s1 }
   0x6   :  { %p172_p2 = pnand %p170_p1, %p167_p0 }
   0x8   :  { %175 = shalt.err (!%p172_p2)
}
   0x9   :  { %s176_s21 = scalar_lea.vmem %s22_s13, 256  ;;  %p181_p4 = scmp.lt.s32.totalorder %s22_s13, %s22_s13 }
   0xa   :  { %p177_p3 = scmp.ne.s32.totalorder %s22_s13, %s176_s21  ;;  %p182_p5 = scmp.lt.s32.totalorder %s176_s21, %s176_s21 }
   0xc   :  { %p183_p6 = por %p182_p5, %p181_p4 }
   0xe   :  { %p184_p7 = pnand %p183_p6, %p177_p3 }
  0x10   :  { %187 = shalt.err (!%p184_p7)
}
  0x11   :  { %s239_s22 = smov 128   ;;  %s240_s23 = smov 8  }
  0x12   :  { %27 = dma.hbm_to_vmem [thread:$0]  %s303_s1, 256, %s22_s13, [#allocation6], %s239_s22, %s239_s22, %s240_s23  }
  0x13   :  { %s241_s26 = smov [#allocation8]   ;;  %s188_s30 = scalar_lea.hbm %s304_s2, 256 }
  0x14   :  { %s37_s27 = sshll.u32 %s241_s26, 4  ;;  %p189_p8 = scmp.ne.s32.totalorder %s304_s2, %s188_s30  ;;  %s38_s27 = int_to_ptr.vmem [resolvable:$true] %s37_s27 }
  0x15   :  { %p192_p9 = scmp.lt.u32.totalorder %s188_s30, %s304_s2 }
  0x17   :  { %p194_p10 = pnand %p192_p9, %p189_p8 }
  0x19   :  { %197 = shalt.err (!%p194_p10)
}
  0x1a   :  { %s198_s8 = scalar_lea.vmem %s38_s27, 256  ;;  %p203_p12 = scmp.lt.s32.totalorder %s38_s27, %s38_s27 }
  0x1b   :  { %p199_p11 = scmp.ne.s32.totalorder %s38_s27, %s198_s8  ;;  %p204_p13 = scmp.lt.s32.totalorder %s198_s8, %s198_s8 }
  0x1d   :  { %p205_p0 = por %p204_p13, %p203_p12 }
  0x1f   :  { %p206_p1 = pnand %p205_p0, %p199_p11 }
  0x21   :  { %209 = shalt.err (!%p206_p1)
}
  0x22   :  { %43 = dma.hbm_to_vmem [thread:$0]  %s304_s2, 256, %s38_s27, [#allocation9], %s239_s22, %s239_s22, %s240_s23  }
  0x23   :  { %232 = dma.done.wait [#allocation6], 256  }
  0x24   :  { %233 = vsyncadd [#allocation6], 4294967040 }
  0x25   :  { %234 = dma.done.wait [#allocation9], 256  }
  0x26   :  { %235 = vsyncadd [#allocation9], 4294967040  ;;  %v60_v0 = vld [vmem:[#allocation5] sm:$0xff]  ;;  %v61_v1 = vld [vmem:[#allocation5 + $0x8] sm:$0xff]  ;;  %s148_s11 = sadd.f32 -1.0, %s302_s0  ;;  %s242_s0 = smov [#allocation10]  }
  0x27   :  { %v68_v2 = vand.u32 2147483647, %v60_v0  ;;  %v69_v3 = vand.u32 2147483647, %v61_v1  ;;  %v62_v14 = vld [vmem:[#allocation8] sm:$0xff]  ;;  %v63_v17 = vld [vmem:[#allocation8 + $0x8] sm:$0xff] }
  0x28   :  { %v101_v16 = vstv %s148_s11  ;;  %v64_v18 = vsub.f32 0.0, %v60_v0  ;;  %v65_v21 = vsub.f32 0.0, %v61_v1  ;;  %v96_v29 = vsub.f32 1.0, %v62_v14  ;;  %s138_s12 = sshll.u32 %s242_s0, 4  ;;  %s139_s12 = int_to_ptr.vmem [resolvable:$true] %s138_s12 }
  0x29   :  { %v70_v4 = vsub.f32 0.0, %v68_v2  ;;  %v71_v5 = vsub.f32 0.0, %v69_v3  ;;  %v102_v23 = vmul.f32 %v101_v16, %v62_v14  ;;  %v103_v25 = vmul.f32 %v101_v16, %v63_v17  ;;  %s210_s13 = scalar_lea.vmem %s139_s12, 128  ;;  %p215_p3 = scmp.lt.s32.totalorder %s139_s12, %s139_s12 }
  0x2a   :  { %v66_v27 = vmax.f32 %v64_v18, 0.0  ;;  %v67_v31 = vmax.f32 %v65_v21, 0.0  ;;  %v97_v33 = vsub.f32 1.0, %v63_v17  ;;  %v98_v40 = vmul.f32 %v96_v29, %v60_v0  ;;  %p211_p2 = scmp.ne.s32.totalorder %s139_s12, %s210_s13  ;;  %p216_p4 = scmp.lt.s32.totalorder %s210_s13, %s210_s13 }
  0x2b   :  { %v72_v6 = vmul.f32 1.442695, %v70_v4  ;;  %v74_v7 = vmul.f32 1.442695, %v71_v5  ;;  %v104_v35 = vadd.f32 1.0, %v102_v23  ;;  %v105_v37 = vadd.f32 1.0, %v103_v25 }
  0x2c   :  { %v99_v42 = vmul.f32 %v97_v33, %v61_v1  ;;  %p217_p5 = por %p216_p4, %p215_p3 }
  0x2d   :  { %154 = vpow2.f32 %v72_v6 }
  0x2e   :  { %156 = vpow2.f32 %v74_v7  ;;  %p218_p6 = pnand %p217_p5, %p211_p2 }
  0x37   :  { %v155_v8 = vpop.eup %154 }
  0x38   :  { %v157_v9 = vpop.eup %156  ;;  %v76_v10 = vadd.f32 1.0, %v155_v8  ;;  %v79_v12 = vmul.f32 -0.5, %v155_v8  ;;  %v82_v19 = vand.u32 2147483647, %v155_v8 }
  0x39   :  { %v85_v11 = vadd.f32 1.0, %v157_v9  ;;  %v88_v13 = vmul.f32 -0.5, %v157_v9  ;;  %v91_v22 = vand.u32 2147483647, %v157_v9 }
  0x3a   :  { %158 = vlog2.f32 %v76_v10  ;;  %v80_v15 = vadd.f32 1.0, %v79_v12  ;;  %vm83_vm0 = vcmp.lt.f32.partialorder %v82_v19, 0.0004427343 }
  0x3b   :  { %160 = vlog2.f32 %v85_v11  ;;  %v89_v20 = vadd.f32 1.0, %v88_v13  ;;  %vm92_vm1 = vcmp.lt.f32.partialorder %v91_v22, 0.0004427343 }
  0x3c   :  { %v81_v24 = vmul.f32 %v155_v8, %v80_v15 }
  0x3d   :  { %v90_v28 = vmul.f32 %v157_v9, %v89_v20 }
  0x44   :  { %v159_v26 = vpop.eup %158 }
  0x45   :  { %v161_v30 = vpop.eup %160  ;;  %v78_v32 = vmul.f32 0.6931472, %v159_v26 }
  0x46   :  { %v87_v34 = vmul.f32 0.6931472, %v161_v30 }
  0x47   :  { %v84_v36 = vsel %vm83_vm0, %v81_v24, %v78_v32 }
  0x48   :  { %v93_v38 = vsel %vm92_vm1, %v90_v28, %v87_v34  ;;  %v94_v39 = vadd.f32 %v84_v36, %v66_v27 }
  0x49   :  { %v95_v41 = vadd.f32 %v93_v38, %v67_v31 }
  0x4a   :  { %v106_v43 = vmul.f32 %v104_v35, %v94_v39 }
  0x4b   :  { %v107_v44 = vmul.f32 %v105_v37, %v95_v41 }
  0x4c   :  { %v108_v45 = vadd.f32 %v106_v43, %v98_v40 }
  0x4d   :  { %v109_v46 = vadd.f32 %v107_v44, %v99_v42 }
  0x4e   :  { %v110_v47 = vsub.f32 0.0, %v108_v45 }
  0x4f   :  { %v111_v48 = vsub.f32 0.0, %v109_v46 }
  0x50   :  { %v112_v49 = vmul.f32 1.442695, %v110_v47 }
  0x51   :  { %v114_v50 = vmul.f32 1.442695, %v111_v48 }
  0x52   :  { %162 = vpow2.f32 %v112_v49 }
  0x53   :  { %164 = vpow2.f32 %v114_v50 }
  0x5c   :  { %v163_v51 = vpop.eup %162 }
  0x5d   :  { %v165_v52 = vpop.eup %164  ;;  %v116_v53 = vsub.f32 1.0, %v163_v51 }
  0x5e   :  { %v117_v54 = vsub.f32 1.0, %v165_v52 }
  0x5f   :  { %v118_v55 = vmul.f32 %v116_v53, %v116_v53 }
  0x60   :  { %v119_v56 = vmul.f32 %v117_v54, %v117_v54 }
  0x61   :  { %v120_v57 = vmul.f32 %v118_v55, %v108_v45 }
  0x62   :  { %v121_v58 = vmul.f32 %v119_v56, %v109_v46 }
  0x64   :  { %v122_v59 = vadd.f32 %v121_v58, %v120_v57 }
  0x66   :  { %131 = vst [vmem:[#allocation10] sm:$0xff] %v122_v59 }
  0x67   :  { %221 = shalt.err (!%p218_p6)
}
  0x68   :  { %s222_s16 = scalar_lea.hbm %s305_s3, 128 }
  0x69   :  { %p223_p7 = scmp.ne.s32.totalorder %s305_s3, %s222_s16  ;;  %p226_p8 = scmp.lt.u32.totalorder %s222_s16, %s305_s3 }
  0x6b   :  { %p228_p9 = pnand %p226_p8, %p223_p7 }
  0x6d   :  { %231 = shalt.err (!%p228_p9)
}
  0x6e   :  { %141 = dma.vmem_to_hbm [thread:$0]  %s139_s12, 128, %s305_s3, [#allocation7]  }
  0x6f   :  { %236 = dma.done.wait [#allocation7], 128  }
  0x70   :  { %237 = vsyncadd [#allocation7], 4294967168 }
  0x71   :  { %145 = vsyncpa [#allocation6], 1 }
  0x72   :  { %146 = vsyncpa [#allocation9], 1 }
  0x73   :  { %147 = vsyncpa [#allocation7], 1 }

</bundles_post_ra>
